<compile_context>
chip_gen: v7x
topology: tpu7x:2x2x1
jax: 0.10.0
libtpu: 0.0.40
codegen_flags: <defaults>
</compile_context>

<pallas_src>
import jax
import jax.numpy as jnp
from jax.experimental import pallas as pl
from jax.experimental.pallas import tpu as pltpu


_LANES = 128      # vreg lane width
_ROW_QUANT = 32   # row-block quantum: legal sublane multiple for f32/bf16/int8


def _mish_kernel(x_ref, o_ref):
    x = x_ref[...].astype(jnp.float32)
    # Numerically stable softplus: log(1+e^x) = max(x,0) + log(1 + e^-|x|).
    # Plain log (instead of log1p) is fine here: the refinement only matters
    # when e^-|x| < ~1e-7, where tanh(softplus(x)) is saturated well past the
    # 1e-5 tolerance anyway.
    z = jnp.exp(-jnp.abs(x))
    sp = jnp.maximum(x, 0.0) + jnp.log(1.0 + z)
    o_ref[...] = (x * jnp.tanh(sp)).astype(o_ref.dtype)


def _round_up(n, m):
    return ((n + m - 1) // m) * m


def _pick_row_block(rows, row_bytes, target_block_bytes):
    """Rows per block: ~target bytes; >=8 even grid steps when splitting."""
    if rows * row_bytes <= target_block_bytes:
        return rows                                   # single full-extent block
    rb = max(_ROW_QUANT,
             (target_block_bytes // row_bytes) // _ROW_QUANT * _ROW_QUANT)
    # Aim for >= 8 steps with an even count so the "parallel" axis splits
    # evenly across v7x's two TensorCores with full double-buffer pipelines.
    nsteps = max(8, pl.cdiv(rows, rb))
    nsteps += nsteps % 2
    rb = min(rb, max(_ROW_QUANT, _round_up(pl.cdiv(rows, nsteps), _ROW_QUANT)))
    return min(rb, rows)


def mish(x, *, target_block_bytes=4 * 1024 * 1024):
    """Elementwise Mish (x * tanh(softplus(x))) via a Pallas TPU kernel."""
    orig_shape = x.shape
    total = x.size
    if total == 0:
        return x
    itemsize = jnp.dtype(x.dtype).itemsize

    # ---- choose a (normally) zero-copy 2-D slab -----------------------------
    pad = 0
    if total % _LANES == 0:
        # Lane-dense slab: contiguous reshape (free), unmasked 128-wide stores.
        cols = _LANES
    else:
        # Ragged total: keep the trailing dim as the lane axis so the reshape
        # stays free (no whole-tensor pad/slice HBM round-trips). Full-extent
        # last-dim blocks are always legal.
        cols = orig_shape[-1] if x.ndim >= 1 else 1
        if cols * itemsize * _ROW_QUANT > target_block_bytes:
            # Pathological corner (huge ragged trailing dim): padded lane-dense
            # fallback. Costs extra HBM passes, but stays legal / in-VMEM.
            pad = _LANES - total % _LANES
            cols = _LANES

    if pad:
        flat = jnp.pad(x.reshape(-1), (0, pad))       # mish(0) = 0, inert
        rows = (total + pad) // cols
        slab = flat.reshape(rows, cols)
    else:
        rows = total // cols
        slab = x.reshape(rows, cols)

    row_bytes = cols * itemsize
    block_rows = _pick_row_block(rows, row_bytes, target_block_bytes)
    grid = (pl.cdiv(rows, block_rows),)   # ragged last row-block masked by Pallas

    out = pl.pallas_call(
        _mish_kernel,
        out_shape=jax.ShapeDtypeStruct((rows, cols), x.dtype),
        grid_spec=pltpu.PrefetchScalarGridSpec(
            num_scalar_prefetch=0,
            grid=grid,
            in_specs=[pl.BlockSpec((block_rows, cols), lambda i: (i, 0))],
            out_specs=pl.BlockSpec((block_rows, cols), lambda i: (i, 0)),
        ),
        compiler_params=pltpu.CompilerParams(
            dimension_semantics=("parallel",),
            # 4 MiB blocks x (in + out) x double-buffer = 16 MiB; raise v5e's
            # 16 MiB default so internal scratch still has headroom.
            vmem_limit_bytes=32 * 1024 * 1024,
        ),
        cost_estimate=pl.CostEstimate(
            flops=6 * total,
            transcendentals=3 * total,
            bytes_accessed=2 * total * itemsize,
        ),
    )(slab)

    if pad:
        out = out.reshape(-1)[:total]
    return out.reshape(orig_shape)


def _mish_ref(x):
    # Independent reference matching the PyTorch module: x * tanh(softplus(x)).
    xf = x.astype(jnp.float32)
    return (xf * jnp.tanh(jax.nn.softplus(xf))).astype(x.dtype)


if __name__ == "__main__":
    key = jax.random.PRNGKey(0)
    # NCHW-style activation, as the surrounding TTS model would pass.
    x = jax.random.normal(key, (2, 4, 16, 16), dtype=jnp.float32) * 3.0
    y = mish(x)
    jax.block_until_ready(y)
    assert y.shape == x.shape and y.dtype == x.dtype
    assert jnp.allclose(y, _mish_ref(x), atol=1e-5, rtol=1e-5)

    # Ragged total (not a multiple of 128) exercises the zero-copy ragged path.
    x2 = jax.random.normal(jax.random.PRNGKey(1), (3, 7, 5), dtype=jnp.float32) * 3.0
    y2 = mish(x2)
    jax.block_until_ready(y2)
    assert y2.shape == x2.shape and y2.dtype == x2.dtype
    assert jnp.allclose(y2, _mish_ref(x2), atol=1e-5, rtol=1e-5)

    print("KERNEL_OK")
</pallas_src>

<mosaic_0001>
module attributes {stable_mosaic.version = 11 : i64} {
  func.func @_mish_kernel(%arg0: i32, %arg1: memref<16x128xf32, #tpu.memory_space<vmem>>, %arg2: memref<16x128xf32, #tpu.memory_space<vmem>>) attributes {dimension_semantics = [#tpu.dimension_semantics<parallel>], iteration_bounds = array<i64: 1>, scalar_prefetch = 0 : i64, scratch_operands = 0 : i64, tpu.core_type = #tpu.core_type<tc>, window_params = [{transform_indices = @transform_0, window_bounds = array<i64: 16, 128>}, {transform_indices = @transform_1, window_bounds = array<i64: 16, 128>}]} {
    %c0 = arith.constant 0 : index
    %c0_0 = arith.constant 0 : index
    %0 = vector.load %arg1[%c0, %c0_0] : memref<16x128xf32, #tpu.memory_space<vmem>>, vector<16x128xf32>
    %1 = math.absf %0 : vector<16x128xf32>
    %cst = arith.constant 0.000000e+00 : f32
    %2 = vector.broadcast %cst : f32 to vector<16x128xf32>
    %3 = arith.subf %2, %1 : vector<16x128xf32>
    %4 = math.exp %3 : vector<16x128xf32>
    %cst_1 = arith.constant 0.000000e+00 : f32
    %5 = vector.broadcast %cst_1 : f32 to vector<16x128xf32>
    %6 = arith.maximumf %0, %5 : vector<16x128xf32>
    %cst_2 = arith.constant 1.000000e+00 : f32
    %7 = vector.broadcast %cst_2 : f32 to vector<16x128xf32>
    %8 = arith.addf %7, %4 : vector<16x128xf32>
    %9 = math.log %8 : vector<16x128xf32>
    %10 = arith.addf %6, %9 : vector<16x128xf32>
    %11 = math.tanh %10 : vector<16x128xf32>
    %12 = arith.mulf %0, %11 : vector<16x128xf32>
    %c0_3 = arith.constant 0 : index
    %c0_4 = arith.constant 0 : index
    %13 = vector.load %arg2[%c0_3, %c0_4] : memref<16x128xf32, #tpu.memory_space<vmem>>, vector<16x128xf32>
    tpu.vector_store %arg2[%c0_3, %c0_4], %12 {strides = array<i32>} : memref<16x128xf32, #tpu.memory_space<vmem>>, vector<16x128xf32>,
    return
  }
  func.func @transform_0(%arg0: i32) -> (i32, i32) {
    %c0_i32 = arith.constant 0 : i32
    %c0_i32_0 = arith.constant 0 : i32
    return %arg0, %c0_i32 : i32, i32
  }
  func.func @transform_1(%arg0: i32) -> (i32, i32) {
    %c0_i32 = arith.constant 0 : i32
    %c0_i32_0 = arith.constant 0 : i32
    return %arg0, %c0_i32 : i32, i32
  }
}

</mosaic_0001>

<bundles_post_ra>
// kernel: tpu_custom_call.1
= control target key start
LH: loop header
LB: loop body
LE: loop exit
PB: predicated region body
PF: predicated region fallthrough
CT: control target
= control target key end

     0   :  { %6 = vsyncpa [#allocation3], 0  ;;  %s174_s0 = inlined_call_operand.hbm [shape: f32[16,128], index: 0, kind: input, shape index: {}]   ;;  %s175_s1 = inlined_call_operand.hbm [shape: f32[16,128], index: 1, kind: output, shape index: {}]  }
   0x1   :  { %7 = vsyncpa [#allocation4], 0  ;;  %s130_s6 = smov [#allocation2]   ;;  %s82_s10 = scalar_lea.hbm %s174_s0, 256 }
   0x2   :  { %s13_s7 = sshll.u32 %s130_s6, 4  ;;  %p83_p0 = scmp.ne.s32.totalorder %s174_s0, %s82_s10  ;;  %s14_s7 = int_to_ptr.vmem [resolvable:$true] %s13_s7 }
   0x3   :  { %p86_p1 = scmp.lt.u32.totalorder %s82_s10, %s174_s0 }
   0x5   :  { %p88_p2 = pnand %p86_p1, %p83_p0 }
   0x7   :  { %91 = shalt.err (!%p88_p2)
}
   0x8   :  { %s92_s15 = scalar_lea.vmem %s14_s7, 256  ;;  %p97_p4 = scmp.lt.s32.totalorder %s14_s7, %s14_s7 }
   0x9   :  { %p93_p3 = scmp.ne.s32.totalorder %s14_s7, %s92_s15  ;;  %p98_p5 = scmp.lt.s32.totalorder %s92_s15, %s92_s15 }
   0xb   :  { %p99_p6 = por %p98_p5, %p97_p4 }
   0xd   :  { %p100_p7 = pnand %p99_p6, %p93_p3 }
   0xf   :  { %103 = shalt.err (!%p100_p7)
}
  0x10   :  { %s131_s16 = smov 128   ;;  %s132_s17 = smov 8  }
  0x11   :  { %19 = dma.hbm_to_vmem [thread:$0]  %s174_s0, 256, %s14_s7, [#allocation3], %s131_s16, %s131_s16, %s132_s17  }
  0x12   :  { %126 = dma.done.wait [#allocation3], 256  }
  0x13   :  { %127 = vsyncadd [#allocation3], 4294967040  ;;  %v23_v0 = vld [vmem:[#allocation2] sm:$0xff]  ;;  %v24_v1 = vld [vmem:[#allocation2 + $0x8] sm:$0xff]  ;;  %s133_s0 = smov [#allocation5]  }
  0x14   :  { %v25_v2 = vand.u32 2147483647, %v23_v0  ;;  %v26_v3 = vand.u32 2147483647, %v24_v1  ;;  %v33_v12 = vmax.f32 %v23_v0, 0.0  ;;  %v34_v14 = vmax.f32 %v24_v1, 0.0 }
  0x15   :  { %s54_s20 = sshll.u32 %s133_s0, 4  ;;  %s55_s20 = int_to_ptr.vmem [resolvable:$true] %s54_s20 }
  0x16   :  { %v27_v4 = vsub.f32 0.0, %v25_v2  ;;  %v28_v5 = vsub.f32 0.0, %v26_v3  ;;  %s104_s21 = scalar_lea.vmem %s55_s20, 256  ;;  %p109_p9 = scmp.lt.s32.totalorder %s55_s20, %s55_s20 }
  0x17   :  { %p105_p8 = scmp.ne.s32.totalorder %s55_s20, %s104_s21  ;;  %p110_p10 = scmp.lt.s32.totalorder %s104_s21, %s104_s21 }
  0x18   :  { %v29_v6 = vmul.f32 1.442695, %v27_v4  ;;  %v31_v7 = vmul.f32 1.442695, %v28_v5 }
  0x19   :  { %p111_p11 = por %p110_p10, %p109_p9 }
  0x1a   :  { %70 = vpow2.f32 %v29_v6 }
  0x1b   :  { %72 = vpow2.f32 %v31_v7  ;;  %p112_p12 = pnand %p111_p11, %p105_p8 }
  0x24   :  { %v71_v8 = vpop.eup %70 }
  0x25   :  { %v73_v9 = vpop.eup %72  ;;  %v35_v10 = vadd.f32 1.0, %v71_v8 }
  0x26   :  { %v36_v11 = vadd.f32 1.0, %v73_v9 }
  0x27   :  { %74 = vlog2.f32 %v35_v10 }
  0x28   :  { %76 = vlog2.f32 %v36_v11 }
  0x31   :  { %v75_v13 = vpop.eup %74 }
  0x32   :  { %v77_v15 = vpop.eup %76  ;;  %v38_v16 = vmul.f32 0.6931472, %v75_v13 }
  0x33   :  { %v40_v17 = vmul.f32 0.6931472, %v77_v15 }
  0x34   :  { %v41_v18 = vadd.f32 %v38_v16, %v33_v12 }
  0x35   :  { %v42_v19 = vadd.f32 %v40_v17, %v34_v14 }
  0x36   :  { %78 = vtanh.f32 %v41_v18 }
  0x37   :  { %80 = vtanh.f32 %v42_v19 }
  0x40   :  { %v79_v20 = vpop.eup %78 }
  0x41   :  { %v81_v21 = vpop.eup %80  ;;  %v45_v22 = vmul.f32 %v79_v20, %v23_v0 }
  0x42   :  { %v46_v23 = vmul.f32 %v81_v21, %v24_v1 }
  0x43   :  { %47 = vst [vmem:[#allocation5] sm:$0xff] %v45_v22 }
  0x44   :  { %48 = vst [vmem:[#allocation5 + $0x8] sm:$0xff] %v46_v23 }
  0x45   :  { %115 = shalt.err (!%p112_p12)
}
  0x46   :  { %s116_s24 = scalar_lea.hbm %s175_s1, 256 }
  0x47   :  { %p117_p13 = scmp.ne.s32.totalorder %s175_s1, %s116_s24  ;;  %p120_p0 = scmp.lt.u32.totalorder %s116_s24, %s175_s1 }
  0x49   :  { %p122_p1 = pnand %p120_p0, %p117_p13 }
  0x4b   :  { %125 = shalt.err (!%p122_p1)
}
  0x4c   :  { %60 = dma.vmem_to_hbm [thread:$0]  %s55_s20, 256, %s175_s1, [#allocation4], %s131_s16, %s131_s16, %s132_s17  }
  0x4d   :  { %128 = dma.done.wait [#allocation4], 256  }
  0x4e   :  { %129 = vsyncadd [#allocation4], 4294967040 }
  0x4f   :  { %64 = vsyncpa [#allocation3], 1 }
  0x50   :  { %65 = vsyncpa [#allocation4], 1 }

</bundles_post_ra>
